<compile_context>
chip_gen: v7x
topology: tpu7x:2x2x1
jax: 0.10.0
libtpu: 0.0.40
codegen_flags: <defaults>
</compile_context>

<pallas_src>
import jax
import jax.numpy as jnp
from jax.experimental import pallas as pl
from jax.experimental.pallas import tpu as pltpu


def _make_copy_kernel(chunk_rows):
    """Per-grid-step direct HBM->HBM DMA of one row-chunk."""

    def _copy_kernel(x_hbm, o_hbm, sem):
        i = pl.program_id(0)
        start = pl.multiple_of(i * chunk_rows, chunk_rows)
        cp = pltpu.make_async_copy(
            x_hbm.at[pl.ds(start, chunk_rows)],
            o_hbm.at[pl.ds(start, chunk_rows)],
            sem,
        )
        cp.start()
        cp.wait()

    return _copy_kernel


def _identity_copy_pallas(x, *, donate=False):
    """Identity copy as a direct HBM->HBM DMA (no VMEM round trip)."""
    orig_shape = x.shape
    total = x.size
    itemsize = jnp.dtype(x.dtype).itemsize
    total_bytes = total * itemsize

    # Lane-dense 2D view; prefer a column width that leaves >= 2 rows so the
    # grid can split across TensorCores.  If nothing fits, a single-row view
    # is still fine: the DMA engine copies arbitrary contiguous shapes and no
    # VMEM tiling constraints apply on this path.
    cols = None
    for c in (4096, 2048, 1024, 512, 256, 128):
        if total % c == 0 and total // c >= 2:
            cols = c
            break
    if cols is None:
        cols, rows = total, 1
    else:
        rows = total // cols
    x2 = x.reshape(rows, cols)

    # 2-4 chunks: even step count lets v7x's two TCs each issue DMAs
    # (dimension_semantics="parallel"); one chunk for tiny/odd shapes.
    if rows % 4 == 0 and total_bytes >= (8 << 20):
        grid_n = 4
    elif rows % 2 == 0:
        grid_n = 2
    else:
        grid_n = 1
    chunk_rows = rows // grid_n

    call_kwargs = {}
    if donate:
        # Only alias when the caller actually donates x; otherwise XLA would
        # insert a defensive copy and double the HBM traffic.
        call_kwargs["input_output_aliases"] = {0: 0}

    out2 = pl.pallas_call(
        _make_copy_kernel(chunk_rows),
        out_shape=jax.ShapeDtypeStruct((rows, cols), x.dtype),
        grid_spec=pltpu.PrefetchScalarGridSpec(
            num_scalar_prefetch=0,
            grid=(grid_n,),
            in_specs=[pl.BlockSpec(memory_space=pl.ANY)],
            out_specs=pl.BlockSpec(memory_space=pl.ANY),
            scratch_shapes=[pltpu.SemaphoreType.DMA(())],
        ),
        compiler_params=pltpu.CompilerParams(
            dimension_semantics=("parallel",),
        ),
        **call_kwargs,
    )(x2)
    return out2.reshape(orig_shape)


def dummy_positional_encoder_forward(x, pos_embed=None, use_class_token=False,
                                     *, force_kernel=False, donate=False):
    """Pallas implementation of DummyPositionalEncoder.forward.

    The dummy forward is `return x`; the default (and optimal) path launches
    no kernel and incurs zero HBM traffic.  Set force_kernel=True to run the
    direct-DMA identity-copy Pallas kernel; set donate=True only when x's
    buffer is actually donated (enables in-place aliasing).
    """
    del pos_embed, use_class_token  # forward() ignores these entirely
    if not force_kernel:
        return x
    return _identity_copy_pallas(x, donate=donate)


if __name__ == "__main__":
    key = jax.random.PRNGKey(0)
    batch, seq, embed_dim = 2, 8, 32
    use_class_token = True

    k_x, k_pe = jax.random.split(key)
    x = jax.random.normal(k_x, (batch, seq, embed_dim), dtype=jnp.float32)

    # Parameter the parent class would hold (unused by the dummy forward).
    max_len = seq + (1 if use_class_token else 0)
    pos_embed = 0.02 * jax.random.normal(
        k_pe, (1, max_len, embed_dim), dtype=jnp.float32
    )

    # Optimal path: identity with no kernel launch.
    out_fast = dummy_positional_encoder_forward(
        x, pos_embed=pos_embed, use_class_token=use_class_token
    )

    # Kernel path (run once): chunked direct HBM->HBM DMA copy.
    out_kernel = dummy_positional_encoder_forward(
        x, pos_embed=pos_embed, use_class_token=use_class_token,
        force_kernel=True,
    )
    out_kernel = jax.block_until_ready(out_kernel)

    assert out_kernel.shape == x.shape and out_kernel.dtype == x.dtype
    assert bool(jnp.all(out_kernel == x))
    assert bool(jnp.all(out_fast == x))
    print("KERNEL_OK")
</pallas_src>

<mosaic_0001>
module attributes {stable_mosaic.version = 11 : i64} {
  func.func @_copy_kernel(%arg0: i32, %arg1: memref<2x256xf32, #tpu.memory_space<any>>, %arg2: memref<2x256xf32, #tpu.memory_space<any>>, %arg3: memref<!tpu.dma_semaphore, #tpu.memory_space<semaphore_mem>>) attributes {dimension_semantics = [#tpu.dimension_semantics<parallel>], iteration_bounds = array<i64: 2>, scalar_prefetch = 0 : i64, scratch_operands = 1 : i64, tpu.core_type = #tpu.core_type<tc>, window_params = [{}, {}]} {
    %c1_i32 = arith.constant 1 : i32
    %0 = arith.muli %arg0, %c1_i32 : i32
    %1 = tpu.assume_multiple %0, 1 : i32
    %c0_i32 = arith.constant 0 : i32
    %2 = tpu.memref_slice %arg1[%1, %c0_i32] : memref<2x256xf32, #tpu.memory_space<any>> -> memref<1x256xf32, #tpu.memory_space<any>>
    %c0_i32_0 = arith.constant 0 : i32
    %3 = tpu.memref_slice %arg2[%1, %c0_i32_0] : memref<2x256xf32, #tpu.memory_space<any>> -> memref<1x256xf32, #tpu.memory_space<any>>
    tpu.enqueue_dma source(%2 : memref<1x256xf32, #tpu.memory_space<any>>) target(%3 : memref<1x256xf32, #tpu.memory_space<any>>) target_semaphore(%arg3 : memref<!tpu.dma_semaphore, #tpu.memory_space<semaphore_mem>>)
    %c0_i32_1 = arith.constant 0 : i32
    %4 = tpu.memref_slice %arg1[%1, %c0_i32_1] : memref<2x256xf32, #tpu.memory_space<any>> -> memref<1x256xf32, #tpu.memory_space<any>>
    %c0_i32_2 = arith.constant 0 : i32
    %5 = tpu.memref_slice %arg2[%1, %c0_i32_2] : memref<2x256xf32, #tpu.memory_space<any>> -> memref<1x256xf32, #tpu.memory_space<any>>
    tpu.wait_dma2 semaphore(%arg3 : memref<!tpu.dma_semaphore, #tpu.memory_space<semaphore_mem>>) src(%4 : memref<1x256xf32, #tpu.memory_space<any>>) dst(%5 : memref<1x256xf32, #tpu.memory_space<any>>)
    return
  }
}

</mosaic_0001>

<bundles_post_ra>
// kernel: tpu_custom_call.1
= control target key start
LH: loop header
LB: loop body
LE: loop exit
PB: predicated region body
PF: predicated region fallthrough
CT: control target
= control target key end

     0   :  { %s85_s6 = smov 0   ;;  %s110_s0 = inlined_call_operand.hbm [shape: f32[2,256], index: 0, kind: input, shape index: {}]   ;;  %s111_s1 = inlined_call_operand.hbm [shape: f32[2,256], index: 1, kind: output, shape index: {}]  }
   0x1 LB: > { %s13_s7 = sshrl.u32 %s87_s6, 1  ;;  %s14_s8 = sand.u32 1, %s87_s6   ;;  %s87_s6 = sphi %s85_s6, %s11_s6  }
   0x2   : > { %s62_s9 = sshll.u32 %s13_s7, 2  ;;  %s89_s11 = smov 32  }
   0x3   : > { %s16_s10 = sadd.s32 %s62_s9, %s14_s8  ;;  %33 = sst [smem:[#allocation4]] %s89_s11 }
   0x4   : > { %s63_s12 = sshll.u32 %s16_s10, 4  ;;  %35 = sst [smem:[#allocation4 + $0x1]] %s89_s11 }
   0x5   : > { %s18_s15 = scalar_lea.hbm %s110_s0, %s63_s12  ;;  %s20_s18 = scalar_lea.hbm %s111_s1, %s63_s12 }
   0x6   : > { %s90_s19 = smov 1   ;;  %s91_s20 = smov [#allocation2]  }
   0x7   : > { %37 = sst [smem:[#allocation4 + $0x2]] %s90_s19  ;;  %s92_s21 = smov [#allocation3]  }
   0x8   : > { %s93_s22 = smov 0  }
   0x9   : > { %39 = dma.general %s18_s15, 32, %s20_s18, %s91_s20, %s92_s21, [#allocation4], %s93_s22, 0  }
   0xa   : > { %83 = dma.done.wait [#allocation2], 32 }
   0xb   : > { %84 = vsyncadd [#allocation2], 4294967264  ;;  %s11_s6 = sadd.s32 1, %s87_s6  }
   0xc   : > { %p8_p0 = scmp.ge.s32.totalorder %s11_s6, 2  }
   0xe   :  { %10 = sbr.rel (!%p8_p0) target bundleno = 1 (0x1), region = 23 }
  0x15   :  { %43 = vsyncmov [#allocation2] }
  0x18   :  { %s44_s23 = vpop.sfrf %43 }
  0x19   :  { %p65_p1 = scmp.ne.s32.totalorder %s44_s23, 0 }
  0x1b   :  { %48 = shalt.err (%p65_p1)  }

</bundles_post_ra>
